<compile_context>
chip_gen: v7x
topology: tpu7x:2x2x1
jax: 0.10.0
libtpu: 0.0.40
codegen_flags: <defaults>
</compile_context>

<pallas_src>
import jax
import jax.numpy as jnp
import numpy as np
from jax.experimental import pallas as pl
from jax.experimental.pallas import tpu as pltpu

_LANE = 128
_MIN_PALLAS_BYTES = 1 << 20          # below this, pallas_call overhead dominates


def _cdiv(a, b):
    return -(-a // b)


def _budgets():
    """(per-array tile-byte target, scoped-vmem limit), sized per TPU generation."""
    tile, vlim = 6 * 1024 * 1024, 48 * 1024 * 1024      # safe on v7x (64 MiB / TC)
    try:
        cap = int(pltpu.get_tpu_info().vmem_capacity_bytes)
        if cap >= 128 * 1024 * 1024:                     # v5e / v6e
            tile, vlim = 8 * 1024 * 1024, 64 * 1024 * 1024
    except Exception:
        pass
    return tile, vlim


def _make_kernel(src_w: int, base_w: int, d: int):
    """Kernel specialized on static widths (source block src_w, base/out block base_w)."""
    need_mask = d < src_w          # d not a multiple of 128: blend inside the head slab
    has_tail = src_w < base_w      # columns >= d_pad are pure pass-through of base

    def kernel(base_ref, src_ref, out_ref):
        b_head = base_ref[:, :src_w] if has_tail else base_ref[...]
        diff = b_head - src_ref[...]
        if need_mask:
            col = jax.lax.broadcasted_iota(jnp.int32, diff.shape, 1)
            diff = jnp.where(col < d, diff, b_head)
        if has_tail:
            out_ref[:, :src_w] = diff
            out_ref[:, src_w:] = base_ref[:, src_w:]     # unchanged columns
        else:
            out_ref[...] = diff

    return kernel


def subtraction_intervention(base, source, interchange_dim, *,
                             donate_base=False, force_pallas=False):
    """Pallas implementation of SubtractionIntervention.forward (subspaces=None).

    base, source: arrays of identical shape/dtype, hidden axis last.
    interchange_dim: static Python int (<= hidden); features [0, d) become
    base - source, the rest stay equal to base.
    donate_base: set True only if `base` is genuinely donated; writes only the
    first ceil(d/128)*128 columns and aliases base into the output.
    """
    assert base.shape == source.shape, "base/source shape mismatch"
    assert base.dtype == source.dtype, "base/source dtype mismatch"

    orig_shape = base.shape
    H = int(orig_shape[-1])
    d = int(interchange_dim)
    d = max(0, min(d, H))
    if d == 0:
        return base

    R = 1
    for n in orig_shape[:-1]:
        R *= int(n)

    itemsize = base.dtype.itemsize
    total_bytes = R * H * itemsize
    tile_bytes, vmem_limit = _budgets()
    sub_mult = max(8, 32 // itemsize)                  # sublane packing per dtype
    max_lanes = tile_bytes // (sub_mult * itemsize)    # keeps TM >= sub_mult

    # --- XLA fast path: non-lane-aligned / oversized H, or tiny tensors -----
    if (H % _LANE != 0) or (H > max_lanes) or \
       (not force_pallas and total_bytes < _MIN_PALLAS_BYTES):
        if d == H:
            return base - source
        return base.at[..., :d].add(-source[..., :d])

    b2 = base.reshape(R, H)
    s2 = source.reshape(R, H)

    # --- column widths: a single full-width column tile (no column grid) ----
    d_pad = _cdiv(d, _LANE) * _LANE
    src_w = min(d_pad, H)                  # source lanes actually needed
    base_w = src_w if donate_base else H   # donated: untouched cols come via alias

    # --- row (sublane) tiling under the per-array byte budget ---------------
    tm = tile_bytes // max(1, base_w * itemsize)
    tm = max(sub_mult, (tm // sub_mult) * sub_mult)
    TM = min(tm, sub_mult * _cdiv(R, sub_mult))
    # Megacore (v7x): guarantee >= 2 row tiles whenever the rows allow it.
    if _cdiv(R, TM) < 2 and R >= 2 * sub_mult:
        TM = sub_mult * _cdiv(_cdiv(R, 2), sub_mult)

    grid = (_cdiv(R, TM),)
    kernel = _make_kernel(src_w, base_w, d)

    cost = pl.CostEstimate(
        flops=R * d,
        transcendentals=0,
        bytes_accessed=R * (2 * base_w + src_w) * itemsize,
    )

    out2 = pl.pallas_call(
        kernel,
        out_shape=jax.ShapeDtypeStruct((R, H), base.dtype),
        grid=grid,
        in_specs=[
            pl.BlockSpec((TM, base_w), lambda i: (i, 0)),
            pl.BlockSpec((TM, src_w), lambda i: (i, 0)),
        ],
        out_specs=pl.BlockSpec((TM, base_w), lambda i: (i, 0)),
        input_output_aliases=({0: 0} if donate_base else {}),
        compiler_params=pltpu.CompilerParams(
            dimension_semantics=("parallel",),
            vmem_limit_bytes=vmem_limit,
        ),
        cost_estimate=cost,
    )(b2, s2)

    return out2.reshape(orig_shape)


def _reference(base, source, d):
    ref = np.asarray(base).copy()
    ref[..., :d] -= np.asarray(source)[..., :d]
    return ref


if __name__ == "__main__":
    key = jax.random.PRNGKey(0)
    k1, k2, k3, k4 = jax.random.split(key, 4)

    # Test 1: module-default small shape (batch=2, seq=8, hidden=32).
    # H < 128 -> XLA fast path (avoids masked sub-128-lane stores).
    B, S, H = 2, 8, 32
    d = 24
    base = jax.random.normal(k1, (B, S, H), dtype=jnp.float32)
    source = jax.random.normal(k2, (B, S, H), dtype=jnp.float32)
    out = jax.block_until_ready(subtraction_intervention(base, source, d))
    np.testing.assert_allclose(np.asarray(out), _reference(base, source, d),
                               rtol=1e-6, atol=1e-6)

    # Test 2: lane-aligned hidden dim, partial interchange_dim -> Pallas kernel
    # with masked head slab + pass-through tail columns.
    H2, d2 = 256, 100
    base2 = jax.random.normal(k3, (B, S, H2), dtype=jnp.float32)
    source2 = jax.random.normal(k4, (B, S, H2), dtype=jnp.float32)
    out2 = jax.block_until_ready(
        subtraction_intervention(base2, source2, d2, force_pallas=True))
    np.testing.assert_allclose(np.asarray(out2), _reference(base2, source2, d2),
                               rtol=1e-6, atol=1e-6)

    # Test 3: d == H (module default: interchange_dim == embed_dim) -> Pallas
    # unmasked full-width subtract.
    out3 = jax.block_until_ready(
        subtraction_intervention(base2, source2, H2, force_pallas=True))
    np.testing.assert_allclose(np.asarray(out3), _reference(base2, source2, H2),
                               rtol=1e-6, atol=1e-6)

    # Test 4: donated-base path (aliased output, only first d_pad columns written).
    out4 = jax.block_until_ready(
        subtraction_intervention(base2, source2, d2,
                                 donate_base=True, force_pallas=True))
    np.testing.assert_allclose(np.asarray(out4), _reference(base2, source2, d2),
                               rtol=1e-6, atol=1e-6)

    print("KERNEL_OK")
</pallas_src>

<mosaic_0001>
module attributes {stable_mosaic.version = 11 : i64} {
  func.func @kernel(%arg0: i32, %arg1: memref<8x256xf32, #tpu.memory_space<vmem>>, %arg2: memref<8x128xf32, #tpu.memory_space<vmem>>, %arg3: memref<8x256xf32, #tpu.memory_space<vmem>>) attributes {dimension_semantics = [#tpu.dimension_semantics<parallel>], iteration_bounds = array<i64: 2>, scalar_prefetch = 0 : i64, scratch_operands = 0 : i64, tpu.core_type = #tpu.core_type<tc>, window_params = [{transform_indices = @transform_0, window_bounds = array<i64: 8, 256>}, {transform_indices = @transform_1, window_bounds = array<i64: 8, 128>}, {transform_indices = @transform_2, window_bounds = array<i64: 8, 256>}]} {
    %c0 = arith.constant 0 : index
    %c0_0 = arith.constant 0 : index
    %0 = vector.load %arg1[%c0, %c0_0] : memref<8x256xf32, #tpu.memory_space<vmem>>, vector<8x128xf32>
    %c0_1 = arith.constant 0 : index
    %c0_2 = arith.constant 0 : index
    %1 = vector.load %arg2[%c0_1, %c0_2] : memref<8x128xf32, #tpu.memory_space<vmem>>, vector<8x128xf32>
    %2 = arith.subf %0, %1 : vector<8x128xf32>
    %3 = tpu.iota {dimensions = array<i32: 1>} : vector<8x128xi32>
    %c100_i32 = arith.constant 100 : i32
    %4 = vector.broadcast %c100_i32 : i32 to vector<8x128xi32>
    %5 = arith.cmpi slt, %3, %4 : vector<8x128xi32>
    %6 = arith.select %5, %2, %0 : vector<8x128xi1>, vector<8x128xf32>
    %c0_3 = arith.constant 0 : index
    %c0_4 = arith.constant 0 : index
    %7 = vector.load %arg3[%c0_3, %c0_4] : memref<8x256xf32, #tpu.memory_space<vmem>>, vector<8x128xf32>
    tpu.vector_store %arg3[%c0_3, %c0_4], %6 {strides = array<i32>} : memref<8x256xf32, #tpu.memory_space<vmem>>, vector<8x128xf32>,
    %c0_5 = arith.constant 0 : index
    %c128 = arith.constant 128 : index
    %8 = vector.load %arg1[%c0_5, %c128] : memref<8x256xf32, #tpu.memory_space<vmem>>, vector<8x128xf32>
    %c0_6 = arith.constant 0 : index
    %c128_7 = arith.constant 128 : index
    %9 = vector.load %arg3[%c0_6, %c128_7] : memref<8x256xf32, #tpu.memory_space<vmem>>, vector<8x128xf32>
    tpu.vector_store %arg3[%c0_6, %c128_7], %8 {strides = array<i32>} : memref<8x256xf32, #tpu.memory_space<vmem>>, vector<8x128xf32>,
    return
  }
  func.func @transform_0(%arg0: i32) -> (i32, i32) {
    %c0_i32 = arith.constant 0 : i32
    %c0_i32_0 = arith.constant 0 : i32
    return %arg0, %c0_i32 : i32, i32
  }
  func.func @transform_1(%arg0: i32) -> (i32, i32) {
    %c0_i32 = arith.constant 0 : i32
    %c0_i32_0 = arith.constant 0 : i32
    return %arg0, %c0_i32 : i32, i32
  }
  func.func @transform_2(%arg0: i32) -> (i32, i32) {
    %c0_i32 = arith.constant 0 : i32
    %c0_i32_0 = arith.constant 0 : i32
    return %arg0, %c0_i32 : i32, i32
  }
}

</mosaic_0001>

<bundles_post_ra>
// kernel: tpu_custom_call.1
= control target key start
LH: loop header
LB: loop body
LE: loop exit
PB: predicated region body
PF: predicated region fallthrough
CT: control target
= control target key end

     0   :  { %7 = vsyncpa [#allocation3], 0  ;;  %s745_s0 = inlined_call_operand.hbm [shape: f32[16,256], index: 0, kind: input, shape index: {}]   ;;  %s746_s1 = inlined_call_operand.hbm [shape: f32[16,256], index: 1, kind: input, shape index: {}]   ;;  %s747_s2 = inlined_call_operand.hbm [shape: f32[16,256], index: 2, kind: output, shape index: {}]  }
   0x1   :  { %9 = vsyncpa [#allocation3 + $0x1], 0 }
   0x2   :  { %10 = vsyncpa [#allocation6], 0 }
   0x3   :  { %12 = vsyncpa [#allocation6 + $0x1], 0 }
   0x4   :  { %13 = vsyncpa [#allocation4], 0 }
   0x5   :  { %15 = vsyncpa [#allocation4 + $0x1], 0  ;;  %s538_s9 = smov 0   ;;  %s540_s10 = smov 0  }
   0x6   :  { %s542_s11 = smov 0   ;;  %s544_s12 = smov 0  }
   0x7 LB: > { %s559_s13 = sadd.s32 4294967295, %s518_s12   ;;  %s316_s14 = sadd.s32 4294967294, %s518_s12   ;;  %s518_s12 = sphi %s544_s12, %s766_s12   ;;  %s514_s11 = sphi %s542_s11, %s765_s11   ;;  %s510_s10 = sphi %s540_s10, %s764_s10   ;;  %s506_s9 = sphi %s538_s9, %s763_s9  }
   0x8   : > { %s563_s15 = sadd.s32 1, %s518_s12   ;;  %s28_s16 = sadd.s32 1, %s514_s11 }
   0x9   : > { %s25_s17 = ssub.s32 %s518_s12, %s563_s15  ;;  %p35_p0 = scmp.ne.s32.totalorder %s514_s11, %s510_s10 }
   0xa   : > { %p26_p1 = scmp.eq.s32.totalorder %s25_s17, 0  ;;  %p36_p2 = scmp.eq.s32.totalorder %s518_s12, 0 }
   0xb   : > { %p41_p3 = scmp.ne.s32.totalorder %s510_s10, %s506_s9  ;;  %p42_p4 = scmp.eq.s32.totalorder %s559_s13, 0 }
   0xc   : > { %s575_s18 = scalar_select %p26_p1, %s514_s11, %s28_s16  }
   0xd   : > { %p577_p5 = por %p36_p2, %p35_p0  ;;  %p581_p6 = por %p42_p4, %p41_p3 }
   0xe   : > { %p91_p7 = scmp.eq.s32.totalorder %s559_s13, 1  ;;  %p97_p8 = scmp.eq.s32.totalorder %s316_s14, 1 }
   0xf   : > { %s751_s20 = scalar_select %p581_p6, 1, 0 }
  0x10   : > { %p354_p10 = scmp.lt.s32.totalorder %s518_s12, 2  ;;  %p588_p11 = por %p91_p7, %p35_p0 }
  0x11   : > { %p592_p12 = por %p97_p8, %p41_p3  ;;  %s597_s23 = sand.u32 1, %s514_s11  }
  0x12   : > { %s752_s21 = scalar_select %p588_p11, 1, 0 }
  0x13   : > { %s753_s22 = scalar_select %p592_p12, 1, 0 }
  0x14   : > { %s334_s24 = sshll.u32 %s518_s12, 8  ;;  %s319_s25 = sshll.u32 %s597_s23, 4 }
  0x15   : > { %s606_s28 = scalar_lea.hbm %s745_s0, %s334_s24  ;;  %s121_s29 = scalar_lea.vmem [#allocation2], %s319_s25 }
  0x16   : > { %s129_s30 = sshll.u32 %s121_s29, 4  ;;  %p610_p13 = pnand %p354_p10, %p577_p5  ;;  %s614_s30 = int_to_ptr.vmem [resolvable:$true] %s129_s30 }
  0x17   : > { %s118_s4 = scalar_lea.sflag [#allocation3], %s597_s23  ;;  %s388_s5 = scalar_lea.hbm %s606_s28, 256 }
  0x18   : > { %p389_p2 = scmp.ne.s32.totalorder %s606_s28, %s388_s5  ;;  %p390_p3 = pneg %p610_p13 }
  0x19   : > { %s393_s8 = scalar_lea.hbm %s745_s0, 512  ;;  %p394_p5 = scmp.lt.u32.totalorder %s606_s28, %s745_s0 }
  0x1a   : > { %p391_p4 = pnand %p390_p3, %p389_p2  ;;  %p395_p8 = scmp.lt.u32.totalorder %s393_s8, %s388_s5 }
  0x1b   : > { %p397_p9 = scmp.lt.u32.totalorder %s388_s5, %s606_s28 }
  0x1c   : > { %p392_p7 = pneg %p391_p4  ;;  %p396_p10 = por %p395_p8, %p394_p5 }
  0x1e   : > { %p398_p0 = por %p397_p9, %p396_p10 }
  0x20   : > { %p399_p1 = pnand %p398_p0, %p392_p7 }
  0x22   : > { %402 = shalt.err (!%p399_p1)
}
  0x23   : > { %s403_s17 = scalar_lea.vmem %s614_s30, 256  ;;  %s520_s19 = smov [#allocation2]  }
  0x24   : > { %p404_p2 = scmp.ne.s32.totalorder %s614_s30, %s403_s17  ;;  %s408_s25 = sshll.u32 %s520_s19, 4  ;;  %s409_s25 = int_to_ptr.vmem [resolvable:$false] %s408_s25 }
  0x25   : > { %s410_s26 = scalar_lea.vmem %s409_s25, 512  ;;  %p411_p11 = scmp.lt.s32.totalorder %s614_s30, %s409_s25 }
  0x26   : > { %p406_p4 = pnand %p404_p2, %p390_p3  ;;  %p412_p5 = scmp.lt.s32.totalorder %s410_s26, %s403_s17 }
  0x28   : > { %p407_p12 = pneg %p406_p4  ;;  %p413_p8 = por %p412_p5, %p411_p11 }
  0x2a   : > { %p414_p9 = pnand %p413_p8, %p407_p12 }
  0x2c   : > { %417 = shalt.err (!%p414_p9)
}
  0x2d   : > { %346 = dma.hbm_to_vmem [thread:$0]  (!%p610_p13), %s606_s28, 256, %s614_s30, %s118_s4  }
  0x2e   : > { %p755_p0 = scmp.lt.s32.totalorder %s518_s12, 3  ;;  %p756_p1 = scmp.ge.s32.totalorder %s518_s12, 1 }
  0x2f   : > { %s322_s29 = sshll.u32 %s597_s23, 3  ;;  %s658_s7 = scalar_lea.hbm %s746_s1, %s334_s24 }
  0x30   : > { %p648_p7 = pnand %p756_p1, %p755_p0  ;;  %s140_s8 = scalar_lea.vmem [#allocation5], %s322_s29 }
  0x31   : > { %s148_s14 = sshll.u32 %s140_s8, 4  ;;  %s137_s28 = scalar_lea.sflag [#allocation6], %s597_s23  ;;  %s149_s14 = int_to_ptr.vmem [resolvable:$true] %s148_s14 }
  0x32   : > { %s757_s27 = scalar_select %p648_p7, 1, 0 }
  0x33   : > { %s418_s30 = scalar_lea.hbm %s658_s7, 128  ;;  %s423_s17 = scalar_lea.hbm %s746_s1, 512 }
  0x34   : > { %p419_p11 = scmp.ne.s32.totalorder %s658_s7, %s418_s30  ;;  %p424_p2 = scmp.lt.u32.totalorder %s658_s7, %s746_s1 }
  0x35   : > { %p425_p4 = scmp.lt.u32.totalorder %s423_s17, %s418_s30  ;;  %p427_p8 = scmp.lt.u32.totalorder %s418_s30, %s658_s7 }
  0x36   : > { %p421_p12 = pnand %p419_p11, %p390_p3 }
  0x37   : > { %p426_p5 = por %p425_p4, %p424_p2 }
  0x38   : > { %p422_p10 = pneg %p421_p12 }
  0x39   : > { %p428_p9 = por %p427_p8, %p426_p5 }
  0x3b   : > { %p429_p0 = pnand %p428_p9, %p422_p10 }
  0x3d   : > { %432 = shalt.err (!%p429_p0)
}
  0x3e   : > { %s433_s23 = scalar_lea.vmem %s149_s14, 128  ;;  %s521_s25 = smov [#allocation5]  }
  0x3f   : > { %p434_p1 = scmp.ne.s32.totalorder %s149_s14, %s433_s23  ;;  %s438_s26 = sshll.u32 %s521_s25, 4  ;;  %s439_s26 = int_to_ptr.vmem [resolvable:$false] %s438_s26 }
  0x40   : > { %s440_s29 = scalar_lea.vmem %s439_s26, 256  ;;  %p441_p6 = scmp.lt.s32.totalorder %s149_s14, %s439_s26 }
  0x41   : > { %p436_p11 = pnand %p434_p1, %p390_p3  ;;  %p442_p7 = scmp.lt.s32.totalorder %s440_s29, %s433_s23 }
  0x43   : > { %p437_p12 = pneg %p436_p11  ;;  %p443_p2 = por %p442_p7, %p441_p6 }
  0x45   : > { %p444_p4 = pnand %p443_p2, %p437_p12 }
  0x47   : > { %447 = shalt.err (!%p444_p4)
}
  0x48   : > { %349 = dma.hbm_to_vmem [thread:$0]  (!%p610_p13), %s658_s7, 128, %s149_s14, %s137_s28  }
  0x49   : > { %p758_p10 = scmp.ne.s32.totalorder %s757_s27, 0 }
  0x4a   : > { %s683_s5 = sand.u32 (!%p758_p10), 1, %s510_s10   ;;  %p759_p3 = scmp.ne.s32.totalorder (!%p758_p10), %s751_s20, 0 }
  0x4b   : > { %157 = sbr.rel (%p758_p10) target bundleno = 112 (0x70), region = 28  ;;  %s326_s6 = sshll.u32 (!%p758_p10), %s683_s5, 4 }
  0x4c   : > { %s160_s8 = scalar_lea.sflag (!%p758_p10), [#allocation3], %s683_s5  ;;  %s163_s30 = scalar_lea.vmem (!%p758_p10), [#allocation2], %s326_s6 }
  0x52   : > { %493 = dma.done.wait (%p759_p3), %s160_s8, 256  }
  0x53   : > { %495 = vsyncadd (%p759_p3), %s160_s8, 4294967040  ;;  %s327_s3 = sshll.u32 %s683_s5, 3  ;;  %s169_s27 = scalar_lea.sflag [#allocation6], %s683_s5 }
  0x54   : > { %s172_s7 = scalar_lea.vmem [#allocation5], %s327_s3 }
  0x55   : > { %497 = dma.done.wait (%p759_p3), %s169_s27, 128  }
  0x56   : > { %499 = vsyncadd (%p759_p3), %s169_s27, 4294967168  ;;  %v201_v0 = vlaneseq  ;;  %s197_s14 = scalar_lea.vmem [#allocation7], %s326_s6  ;;  %s336_s4 = sshll.u32 %s559_s13, 8  ;;  %v198_v2 = vld [vmem:[%s163_s30] sm:$0xff]  ;;  %v206_v4 = vld [vmem:[%s163_s30 + $0x8] sm:$0xff] }
  0x57   : > { %s223_s28 = sshll.u32 %s197_s14, 4  ;;  %v199_v3 = vld [vmem:[%s172_s7] sm:$0xff]  ;;  %207 = vst [vmem:[%s197_s14 + $0x8] sm:$0xff] %v206_v4  ;;  %s703_s20 = scalar_lea.hbm %s747_s2, %s336_s4  ;;  %s698_s28 = int_to_ptr.vmem [resolvable:$true] %s223_s28 }
  0x58   : > { %v202_v1 = vand.u32 127, %v201_v0  ;;  %v200_v5 = vsub.f32 %v198_v2, %v199_v3  ;;  %s209_s24 = scalar_lea.sflag [#allocation4], %s683_s5  ;;  %s448_s13 = scalar_lea.vmem %s698_s28, 256 }
  0x59   : > { %p449_p6 = scmp.ne.s32.totalorder %s698_s28, %s448_s13  ;;  %p760_p13 = scmp.ne.s32.totalorder %s752_s21, 0 }
  0x5a   : > { %vm203_vm0 = vcmp.lt.s32.totalorder %v202_v1, 100  ;;  %s522_s19 = smov [#allocation7]  }
  0x5b   : > { %v204_v6 = vsel %vm203_vm0, %v200_v5, %v198_v2  ;;  %p450_p7 = pnand %p449_p6, %p760_p13  ;;  %s452_s23 = sshll.u32 %s522_s19, 4  ;;  %s453_s23 = int_to_ptr.vmem [resolvable:$false] %s452_s23 }
  0x5c   : > { %205 = vst [vmem:[%s197_s14] sm:$0xff] %v204_v6  ;;  %s454_s25 = scalar_lea.vmem %s453_s23, 512  ;;  %p455_p8 = scmp.lt.s32.totalorder %s698_s28, %s453_s23 }
  0x5d   : > { %p451_p5 = pneg %p450_p7  ;;  %p456_p9 = scmp.lt.s32.totalorder %s454_s25, %s448_s13 }
  0x5f   : > { %p457_p0 = por %p456_p9, %p455_p8 }
  0x61   : > { %p458_p1 = pnand %p457_p0, %p451_p5 }
  0x63   : > { %461 = shalt.err (!%p458_p1)
}
  0x64   : > { %s462_s26 = scalar_lea.hbm %s703_s20, 256  ;;  %s466_s6 = scalar_lea.hbm %s747_s2, 512 }
  0x65   : > { %p463_p11 = scmp.ne.s32.totalorder %s703_s20, %s462_s26  ;;  %p467_p4 = scmp.lt.u32.totalorder %s703_s20, %s747_s2 }
  0x66   : > { %p468_p10 = scmp.lt.u32.totalorder %s466_s6, %s462_s26  ;;  %p470_p6 = scmp.lt.u32.totalorder %s462_s26, %s703_s20 }
  0x67   : > { %p464_p12 = pnand %p463_p11, %p760_p13 }
  0x68   : > { %p469_p3 = por %p468_p10, %p467_p4 }
  0x69   : > { %p465_p2 = pneg %p464_p12 }
  0x6a   : > { %p471_p7 = por %p470_p6, %p469_p3 }
  0x6c   : > { %p472_p5 = pnand %p471_p7, %p465_p2 }
  0x6e   : > { %475 = shalt.err (!%p472_p5)
}
  0x6f   : > { %341 = dma.vmem_to_hbm [thread:$0]  (%p760_p13), %s698_s28, 256, %s703_s20, %s209_s24  }
  0x70 PF: > { %s235_s3 = sand.u32 1, %s506_s9   ;;  %p761_p8 = scmp.ne.s32.totalorder %s753_s22, 0 }
  0x71   : > { %p762_p9 = scmp.ge.s32.totalorder %s518_s12, 2  ;;  %s236_s27 = scalar_lea.sflag [#allocation4], %s235_s3 }
  0x73   : > { %p351_p0 = pnand %p762_p9, %p761_p8 }
  0x75   : > { %501 = dma.done.wait (!%p351_p0), %s236_s27, 256  }
  0x76   : > { %503 = vsyncadd (!%p351_p0), %s236_s27, 4294967040  ;;  %p18_p1 = scmp.ge.s32.totalorder %s563_s15, 4   ;;  %s763_s9 = smov %s510_s10 }
  0x77   : > { %s764_s10 = smov %s514_s11  ;;  %s765_s11 = smov %s575_s18 }
  0x78   : > { %s766_s12 = smov %s563_s15  ;;  %20 = sbr.rel (!%p18_p1) target bundleno = 7 (0x7), region = 86 }
  0x7f   :  { %241 = vsyncpa [#allocation3], 1 }
  0x80   :  { %243 = vsyncpa [#allocation3 + $0x1], 1 }
  0x81   :  { %244 = vsyncpa [#allocation6], 1 }
  0x82   :  { %246 = vsyncpa [#allocation6 + $0x1], 1 }
  0x83   :  { %247 = vsyncpa [#allocation4], 1 }
  0x84   :  { %249 = vsyncpa [#allocation4 + $0x1], 1 }

</bundles_post_ra>
